<compile_context>
chip_gen: v7x
topology: tpu7x:2x2x1
jax: 0.10.0
libtpu: 0.0.40
codegen_flags: <defaults>
</compile_context>

<pallas_src>
import functools

import jax
import jax.numpy as jnp
from jax.experimental import pallas as pl
from jax.experimental.pallas import tpu as pltpu


# Tap order (dy, dx) shared by the kernel, the mask table and the weight packing.
TAPS = tuple((dy, dx) for dy in (-1, 0, 1) for dx in (-1, 0, 1))


def residual_block_kernel(x_ref, w1_ref, w2_ref, wr_ref, sb_ref, mask_ref, o_ref,
                          *, H, W):
    HW = H * W

    x = x_ref[0].astype(jnp.float32)         # (Cin_p, HW)
    w1 = w1_ref[...].astype(jnp.float32)     # (Cout_p, 9*Cin_p)
    w2 = w2_ref[...].astype(jnp.float32)     # (Cout_p, 9*Cout_p)
    wr = wr_ref[...].astype(jnp.float32)     # (Cout_p, Cin_p)
    sb = sb_ref[...]                         # (5, Cout_p, 1) f32
    masks = mask_ref[...]                    # (9, 1, HW) f32, 1.0 = valid / 0.0 = pad
    s1, b1, s2, b2, br = sb[0], sb[1], sb[2], sb[3], sb[4]

    def im2col(a):
        # a: (C, HW) -> (9*C, HW).  Piece t is `a` shifted by tap (dy, dx) with
        # conv padding=1 zeros, realized as a lane rotation + 0/1 mask multiply.
        pieces = []
        for t, (dy, dx) in enumerate(TAPS):
            delta = dy * W + dx
            if delta == 0:
                shifted = a
            else:
                shifted = pltpu.roll(a, shift=(-delta) % HW, axis=1)
            pieces.append(shifted * masks[t])
        # All pieces are (C_pad, HW) with C_pad a multiple of 8 -> aligned concat.
        return jnp.concatenate(pieces, axis=0)

    # conv1 (3x3, pad=1) as one (Cout_p, 9*Cin_p) x (9*Cin_p, HW) MXU matmul,
    # then folded BN1 + ReLU.
    acc1 = jnp.dot(w1, im2col(x), preferred_element_type=jnp.float32)
    h = jnp.maximum(acc1 * s1 + b1, 0.0)     # (Cout_p, HW)

    # conv2 (3x3, pad=1) + folded BN2.
    acc2 = jnp.dot(w2, im2col(h), preferred_element_type=jnp.float32)
    out2 = acc2 * s2 + b2

    # 1x1 residual conv on the original input.
    res = jnp.dot(wr, x, preferred_element_type=jnp.float32) + br

    # add + final ReLU; (Cout_p, HW) store is fully lane-dense.
    o_ref[0] = jnp.maximum(out2 + res, 0.0).astype(o_ref.dtype)


def residual_block_pallas(x_nchw, params, *, param_dtype=jnp.bfloat16):
    """x_nchw: (N, Cin, H, W) float32.  Returns (N, Cout, H, W) float32."""
    (w1, b1, g1, be1, m1, v1,
     w2, b2, g2, be2, m2, v2,
     wr, br) = params
    eps = 1e-5

    N, Cin, H, W = x_nchw.shape
    Cout = w1.shape[-1]
    HW = H * W

    rup = lambda v, m: (v + m - 1) // m * m
    Cin_p = rup(Cin, 8)
    Cout_p = rup(Cout, 8)

    # (N, Cin, H, W) -> (N, Cin_p, H*W): spatial flattened onto the lane axis,
    # channels zero-padded to a sublane multiple of 8.  Stored as bf16 in HBM.
    x = x_nchw.reshape(N, Cin, HW).astype(jnp.float32)
    x = jnp.pad(x, ((0, 0), (0, Cin_p - Cin), (0, 0))).astype(param_dtype)

    # 3x3 conv weights (HWIO) -> (Cout_p, 9*C_p); columns are tap-major /
    # channel-minor, matching the im2col row order built inside the kernel.
    def pack3x3(w_hwio, c_in_p, c_out_p):
        kh, kw, ci, co = w_hwio.shape
        wp = jnp.zeros((kh, kw, c_in_p, c_out_p), jnp.float32)
        wp = wp.at[:, :, :ci, :co].set(w_hwio.astype(jnp.float32))
        wp = jnp.transpose(wp, (3, 0, 1, 2)).reshape(c_out_p, kh * kw * c_in_p)
        return wp.astype(param_dtype)

    w1_p = pack3x3(w1, Cin_p, Cout_p)                   # (Cout_p, 9*Cin_p)
    w2_p = pack3x3(w2, Cout_p, Cout_p)                  # (Cout_p, 9*Cout_p)

    wr_p = jnp.zeros((Cout_p, Cin_p), jnp.float32)
    wr_p = wr_p.at[:Cout, :Cin].set(wr.T.astype(jnp.float32)).astype(param_dtype)

    # Fold conv bias + eval-mode BN into per-channel scale/bias and pack ALL five
    # per-channel vectors into one f32 array (single DMA / single VMEM buffer):
    #   BN(conv(x) + b) = conv(x)*scale + ((b - mean)*scale + beta)
    s1 = g1 / jnp.sqrt(v1 + eps)
    bias1 = (b1 - m1) * s1 + be1
    s2 = g2 / jnp.sqrt(v2 + eps)
    bias2 = (b2 - m2) * s2 + be2
    pad_c = lambda v: jnp.pad(v.astype(jnp.float32), (0, Cout_p - Cout))
    sb = jnp.stack([pad_c(s1), pad_c(bias1), pad_c(s2), pad_c(bias2), pad_c(br)],
                   axis=0).reshape(5, Cout_p, 1)

    # 0/1 validity masks for the 9 conv taps (implements padding=1 zero padding).
    row = jnp.repeat(jnp.arange(H), W)                  # (HW,)
    col = jnp.tile(jnp.arange(W), H)                    # (HW,)
    masks = jnp.stack(
        [((row + dy >= 0) & (row + dy < H) & (col + dx >= 0) & (col + dx < W))
         for dy, dx in TAPS],
        axis=0).astype(jnp.float32).reshape(9, 1, HW)

    kernel = functools.partial(residual_block_kernel, H=H, W=W)

    grid_spec = pltpu.PrefetchScalarGridSpec(
        num_scalar_prefetch=0,
        grid=(N,),
        in_specs=[
            pl.BlockSpec((1, Cin_p, HW), lambda n: (n, 0, 0)),       # x (bf16)
            pl.BlockSpec((Cout_p, 9 * Cin_p), lambda n: (0, 0)),     # w1 (bf16)
            pl.BlockSpec((Cout_p, 9 * Cout_p), lambda n: (0, 0)),    # w2 (bf16)
            pl.BlockSpec((Cout_p, Cin_p), lambda n: (0, 0)),         # wr (bf16)
            pl.BlockSpec((5, Cout_p, 1), lambda n: (0, 0, 0)),       # scale/bias (f32)
            pl.BlockSpec((9, 1, HW), lambda n: (0, 0, 0)),           # tap masks (f32)
        ],
        out_specs=pl.BlockSpec((1, Cout_p, HW), lambda n: (n, 0, 0)),
    )

    out = pl.pallas_call(
        kernel,
        out_shape=jax.ShapeDtypeStruct((N, Cout_p, HW), jnp.float32),
        grid_spec=grid_spec,
        compiler_params=pltpu.CompilerParams(
            dimension_semantics=("parallel",)),
    )(x, w1_p, w2_p, wr_p, sb, masks)

    # Drop channel padding, restore NCHW to match the PyTorch module's convention.
    return out[:, :Cout, :].reshape(N, Cout, H, W)


def residual_block_reference(x_nchw, params):
    """Pure-JAX f32 reference (eval-mode BN), for correctness checking."""
    (w1, b1, g1, be1, m1, v1,
     w2, b2, g2, be2, m2, v2,
     wr, br) = params
    eps = 1e-5
    x = jnp.transpose(x_nchw, (0, 2, 3, 1)).astype(jnp.float32)

    def conv(inp, w, pad):
        return jax.lax.conv_general_dilated(
            inp, w, window_strides=(1, 1),
            padding=[(pad, pad), (pad, pad)],
            dimension_numbers=("NHWC", "HWIO", "NHWC"))

    h = conv(x, w1, 1) + b1
    h = (h - m1) / jnp.sqrt(v1 + eps) * g1 + be1
    h = jnp.maximum(h, 0.0)
    o = conv(h, w2, 1) + b2
    o = (o - m2) / jnp.sqrt(v2 + eps) * g2 + be2
    r = conv(x, wr.reshape(1, 1, *wr.shape), 0) + br
    out = jnp.maximum(o + r, 0.0)
    return jnp.transpose(out, (0, 3, 1, 2))


def init_params(key, cin, cout):
    ks = jax.random.split(key, 10)
    w1 = 0.1 * jax.random.normal(ks[0], (3, 3, cin, cout), jnp.float32)
    b1 = 0.05 * jax.random.normal(ks[1], (cout,), jnp.float32)
    w2 = 0.1 * jax.random.normal(ks[2], (3, 3, cout, cout), jnp.float32)
    b2 = 0.05 * jax.random.normal(ks[3], (cout,), jnp.float32)
    wr = 0.1 * jax.random.normal(ks[4], (cin, cout), jnp.float32)
    br = 0.05 * jax.random.normal(ks[5], (cout,), jnp.float32)
    # eval-mode BN params (deterministic, non-trivial)
    g1 = 1.0 + 0.1 * jax.random.normal(ks[6], (cout,), jnp.float32)
    be1 = 0.05 * jax.random.normal(ks[7], (cout,), jnp.float32)
    m1 = 0.02 * jax.random.normal(ks[8], (cout,), jnp.float32)
    v1 = 1.0 + 0.1 * jnp.abs(jax.random.normal(ks[9], (cout,), jnp.float32))
    g2 = 1.0 - 0.05 * jnp.arange(cout, dtype=jnp.float32) / cout
    be2 = 0.01 * jnp.arange(cout, dtype=jnp.float32)
    m2 = 0.01 * jnp.ones((cout,), jnp.float32)
    v2 = 1.0 + 0.05 * jnp.ones((cout,), jnp.float32)
    return (w1, b1, g1, be1, m1, v1,
            w2, b2, g2, be2, m2, v2,
            wr, br)


if __name__ == "__main__":
    key = jax.random.PRNGKey(0)
    kx, kp = jax.random.split(key)

    N, Cin, Cout, H, W = 2, 4, 8, 16, 16
    x = jax.random.normal(kx, (N, Cin, H, W), jnp.float32)
    params = init_params(kp, Cin, Cout)

    out = jax.block_until_ready(residual_block_pallas(x, params))
    ref = jax.block_until_ready(residual_block_reference(x, params))

    assert out.shape == (N, Cout, H, W), out.shape
    err = float(jnp.max(jnp.abs(out - ref)))
    # bf16 activations/weights (f32 accumulation) vs f32 reference -> relaxed tolerance.
    assert err < 5e-2, err
    print("KERNEL_OK")
</pallas_src>

<mosaic_0001>
module attributes {stable_mosaic.version = 11 : i64} {
  func.func @residual_block_kernel(%arg0: i32, %arg1: memref<1x8x256xbf16, #tpu.memory_space<vmem>>, %arg2: memref<8x72xbf16, #tpu.memory_space<vmem>>, %arg3: memref<8x72xbf16, #tpu.memory_space<vmem>>, %arg4: memref<8x8xbf16, #tpu.memory_space<vmem>>, %arg5: memref<5x8x1xf32, #tpu.memory_space<vmem>>, %arg6: memref<9x1x256xf32, #tpu.memory_space<vmem>>, %arg7: memref<1x8x256xf32, #tpu.memory_space<vmem>>) attributes {dimension_semantics = [#tpu.dimension_semantics<parallel>], iteration_bounds = array<i64: 2>, scalar_prefetch = 0 : i64, scratch_operands = 0 : i64, tpu.core_type = #tpu.core_type<tc>, window_params = [{transform_indices = @transform_0, window_bounds = array<i64: 1, 8, 256>}, {pipeline_mode = #tpu.pipeline_mode<synchronous>, transform_indices = @transform_1, window_bounds = array<i64: 8, 72>}, {pipeline_mode = #tpu.pipeline_mode<synchronous>, transform_indices = @transform_2, window_bounds = array<i64: 8, 72>}, {pipeline_mode = #tpu.pipeline_mode<synchronous>, transform_indices = @transform_3, window_bounds = array<i64: 8, 8>}, {pipeline_mode = #tpu.pipeline_mode<synchronous>, transform_indices = @transform_4, window_bounds = array<i64: 5, 8, 1>}, {pipeline_mode = #tpu.pipeline_mode<synchronous>, transform_indices = @transform_5, window_bounds = array<i64: 9, 1, 256>}, {transform_indices = @transform_6, window_bounds = array<i64: 1, 8, 256>}]} {
    %c0 = arith.constant 0 : index
    %c0_0 = arith.constant 0 : index
    %c0_1 = arith.constant 0 : index
    %0 = vector.load %arg1[%c0, %c0_0, %c0_1] : memref<1x8x256xbf16, #tpu.memory_space<vmem>>, vector<1x8x256xbf16>
    %1 = vector.shape_cast %0 : vector<1x8x256xbf16> to vector<8x256xbf16>
    %2 = arith.extf %1 : vector<8x256xbf16> to vector<8x256xf32>
    %c0_2 = arith.constant 0 : index
    %c0_3 = arith.constant 0 : index
    %3 = vector.load %arg2[%c0_2, %c0_3] : memref<8x72xbf16, #tpu.memory_space<vmem>>, vector<8x72xbf16>
    %4 = arith.extf %3 : vector<8x72xbf16> to vector<8x72xf32>
    %c0_4 = arith.constant 0 : index
    %c0_5 = arith.constant 0 : index
    %5 = vector.load %arg3[%c0_4, %c0_5] : memref<8x72xbf16, #tpu.memory_space<vmem>>, vector<8x72xbf16>
    %6 = arith.extf %5 : vector<8x72xbf16> to vector<8x72xf32>
    %c0_6 = arith.constant 0 : index
    %c0_7 = arith.constant 0 : index
    %7 = vector.load %arg4[%c0_6, %c0_7] : memref<8x8xbf16, #tpu.memory_space<vmem>>, vector<8x8xbf16>
    %8 = arith.extf %7 : vector<8x8xbf16> to vector<8x8xf32>
    %c0_8 = arith.constant 0 : index
    %c0_9 = arith.constant 0 : index
    %c0_10 = arith.constant 0 : index
    %9 = vector.load %arg5[%c0_8, %c0_9, %c0_10] : memref<5x8x1xf32, #tpu.memory_space<vmem>>, vector<5x8x1xf32>
    %c0_11 = arith.constant 0 : index
    %c0_12 = arith.constant 0 : index
    %c0_13 = arith.constant 0 : index
    %10 = vector.load %arg6[%c0_11, %c0_12, %c0_13] : memref<9x1x256xf32, #tpu.memory_space<vmem>>, vector<9x1x256xf32>
    %11 = vector.extract_strided_slice %9 {offsets = [0, 0, 0], sizes = [1, 8, 1], strides = [1, 1, 1]} : vector<5x8x1xf32> to vector<1x8x1xf32>
    %12 = vector.shape_cast %11 : vector<1x8x1xf32> to vector<8x1xf32>
    %13 = vector.extract_strided_slice %9 {offsets = [1, 0, 0], sizes = [1, 8, 1], strides = [1, 1, 1]} : vector<5x8x1xf32> to vector<1x8x1xf32>
    %14 = vector.shape_cast %13 : vector<1x8x1xf32> to vector<8x1xf32>
    %15 = vector.extract_strided_slice %9 {offsets = [2, 0, 0], sizes = [1, 8, 1], strides = [1, 1, 1]} : vector<5x8x1xf32> to vector<1x8x1xf32>
    %16 = vector.shape_cast %15 : vector<1x8x1xf32> to vector<8x1xf32>
    %17 = vector.extract_strided_slice %9 {offsets = [3, 0, 0], sizes = [1, 8, 1], strides = [1, 1, 1]} : vector<5x8x1xf32> to vector<1x8x1xf32>
    %18 = vector.shape_cast %17 : vector<1x8x1xf32> to vector<8x1xf32>
    %19 = vector.extract_strided_slice %9 {offsets = [4, 0, 0], sizes = [1, 8, 1], strides = [1, 1, 1]} : vector<5x8x1xf32> to vector<1x8x1xf32>
    %20 = vector.shape_cast %19 : vector<1x8x1xf32> to vector<8x1xf32>
    %c17_i32 = arith.constant 17 : i32
    %21 = tpu.dynamic_rotate %2 by %c17_i32 dim 1 : vector<8x256xf32>, i32 -> vector<8x256xf32>
    %22 = vector.extract_strided_slice %10 {offsets = [0, 0, 0], sizes = [1, 1, 256], strides = [1, 1, 1]} : vector<9x1x256xf32> to vector<1x1x256xf32>
    %23 = vector.shape_cast %22 : vector<1x1x256xf32> to vector<1x256xf32>
    %24 = vector.broadcast %23 : vector<1x256xf32> to vector<8x256xf32>
    %25 = arith.mulf %21, %24 : vector<8x256xf32>
    %c16_i32 = arith.constant 16 : i32
    %26 = tpu.dynamic_rotate %2 by %c16_i32 dim 1 : vector<8x256xf32>, i32 -> vector<8x256xf32>
    %27 = vector.extract_strided_slice %10 {offsets = [1, 0, 0], sizes = [1, 1, 256], strides = [1, 1, 1]} : vector<9x1x256xf32> to vector<1x1x256xf32>
    %28 = vector.shape_cast %27 : vector<1x1x256xf32> to vector<1x256xf32>
    %29 = vector.broadcast %28 : vector<1x256xf32> to vector<8x256xf32>
    %30 = arith.mulf %26, %29 : vector<8x256xf32>
    %c15_i32 = arith.constant 15 : i32
    %31 = tpu.dynamic_rotate %2 by %c15_i32 dim 1 : vector<8x256xf32>, i32 -> vector<8x256xf32>
    %32 = vector.extract_strided_slice %10 {offsets = [2, 0, 0], sizes = [1, 1, 256], strides = [1, 1, 1]} : vector<9x1x256xf32> to vector<1x1x256xf32>
    %33 = vector.shape_cast %32 : vector<1x1x256xf32> to vector<1x256xf32>
    %34 = vector.broadcast %33 : vector<1x256xf32> to vector<8x256xf32>
    %35 = arith.mulf %31, %34 : vector<8x256xf32>
    %c1_i32 = arith.constant 1 : i32
    %36 = tpu.dynamic_rotate %2 by %c1_i32 dim 1 : vector<8x256xf32>, i32 -> vector<8x256xf32>
    %37 = vector.extract_strided_slice %10 {offsets = [3, 0, 0], sizes = [1, 1, 256], strides = [1, 1, 1]} : vector<9x1x256xf32> to vector<1x1x256xf32>
    %38 = vector.shape_cast %37 : vector<1x1x256xf32> to vector<1x256xf32>
    %39 = vector.broadcast %38 : vector<1x256xf32> to vector<8x256xf32>
    %40 = arith.mulf %36, %39 : vector<8x256xf32>
    %41 = vector.extract_strided_slice %10 {offsets = [4, 0, 0], sizes = [1, 1, 256], strides = [1, 1, 1]} : vector<9x1x256xf32> to vector<1x1x256xf32>
    %42 = vector.shape_cast %41 : vector<1x1x256xf32> to vector<1x256xf32>
    %43 = vector.broadcast %42 : vector<1x256xf32> to vector<8x256xf32>
    %44 = arith.mulf %2, %43 : vector<8x256xf32>
    %c255_i32 = arith.constant 255 : i32
    %45 = tpu.dynamic_rotate %2 by %c255_i32 dim 1 : vector<8x256xf32>, i32 -> vector<8x256xf32>
    %46 = vector.extract_strided_slice %10 {offsets = [5, 0, 0], sizes = [1, 1, 256], strides = [1, 1, 1]} : vector<9x1x256xf32> to vector<1x1x256xf32>
    %47 = vector.shape_cast %46 : vector<1x1x256xf32> to vector<1x256xf32>
    %48 = vector.broadcast %47 : vector<1x256xf32> to vector<8x256xf32>
    %49 = arith.mulf %45, %48 : vector<8x256xf32>
    %c241_i32 = arith.constant 241 : i32
    %50 = tpu.dynamic_rotate %2 by %c241_i32 dim 1 : vector<8x256xf32>, i32 -> vector<8x256xf32>
    %51 = vector.extract_strided_slice %10 {offsets = [6, 0, 0], sizes = [1, 1, 256], strides = [1, 1, 1]} : vector<9x1x256xf32> to vector<1x1x256xf32>
    %52 = vector.shape_cast %51 : vector<1x1x256xf32> to vector<1x256xf32>
    %53 = vector.broadcast %52 : vector<1x256xf32> to vector<8x256xf32>
    %54 = arith.mulf %50, %53 : vector<8x256xf32>
    %c240_i32 = arith.constant 240 : i32
    %55 = tpu.dynamic_rotate %2 by %c240_i32 dim 1 : vector<8x256xf32>, i32 -> vector<8x256xf32>
    %56 = vector.extract_strided_slice %10 {offsets = [7, 0, 0], sizes = [1, 1, 256], strides = [1, 1, 1]} : vector<9x1x256xf32> to vector<1x1x256xf32>
    %57 = vector.shape_cast %56 : vector<1x1x256xf32> to vector<1x256xf32>
    %58 = vector.broadcast %57 : vector<1x256xf32> to vector<8x256xf32>
    %59 = arith.mulf %55, %58 : vector<8x256xf32>
    %c239_i32 = arith.constant 239 : i32
    %60 = tpu.dynamic_rotate %2 by %c239_i32 dim 1 : vector<8x256xf32>, i32 -> vector<8x256xf32>
    %61 = vector.extract_strided_slice %10 {offsets = [8, 0, 0], sizes = [1, 1, 256], strides = [1, 1, 1]} : vector<9x1x256xf32> to vector<1x1x256xf32>
    %62 = vector.shape_cast %61 : vector<1x1x256xf32> to vector<1x256xf32>
    %63 = vector.broadcast %62 : vector<1x256xf32> to vector<8x256xf32>
    %64 = arith.mulf %60, %63 : vector<8x256xf32>
    %65 = tpu.concatenate %25, %30, %35, %40, %44, %49, %54, %59, %64 in 0 : vector<8x256xf32>, vector<8x256xf32>, vector<8x256xf32>, vector<8x256xf32>, vector<8x256xf32>, vector<8x256xf32>, vector<8x256xf32>, vector<8x256xf32>, vector<8x256xf32> -> vector<72x256xf32>
    %cst = arith.constant dense<0.000000e+00> : vector<8x256xf32>
    %66 = tpu.matmul %4, %65, %cst {dimension_numbers = #tpu.dot_dimension_numbers<[1], [0], [0], [1], [0, 0, 1, 1], [], []>} : vector<8x72xf32>, vector<72x256xf32>, vector<8x256xf32> -> vector<8x256xf32>
    %67 = vector.broadcast %12 : vector<8x1xf32> to vector<8x256xf32>
    %68 = arith.mulf %66, %67 : vector<8x256xf32>
    %69 = vector.broadcast %14 : vector<8x1xf32> to vector<8x256xf32>
    %70 = arith.addf %68, %69 : vector<8x256xf32>
    %cst_14 = arith.constant 0.000000e+00 : f32
    %71 = vector.broadcast %cst_14 : f32 to vector<8x256xf32>
    %72 = arith.maximumf %70, %71 : vector<8x256xf32>
    %c17_i32_15 = arith.constant 17 : i32
    %73 = tpu.dynamic_rotate %72 by %c17_i32_15 dim 1 : vector<8x256xf32>, i32 -> vector<8x256xf32>
    %74 = vector.extract_strided_slice %10 {offsets = [0, 0, 0], sizes = [1, 1, 256], strides = [1, 1, 1]} : vector<9x1x256xf32> to vector<1x1x256xf32>
    %75 = vector.shape_cast %74 : vector<1x1x256xf32> to vector<1x256xf32>
    %76 = vector.broadcast %75 : vector<1x256xf32> to vector<8x256xf32>
    %77 = arith.mulf %73, %76 : vector<8x256xf32>
    %c16_i32_16 = arith.constant 16 : i32
    %78 = tpu.dynamic_rotate %72 by %c16_i32_16 dim 1 : vector<8x256xf32>, i32 -> vector<8x256xf32>
    %79 = vector.extract_strided_slice %10 {offsets = [1, 0, 0], sizes = [1, 1, 256], strides = [1, 1, 1]} : vector<9x1x256xf32> to vector<1x1x256xf32>
    %80 = vector.shape_cast %79 : vector<1x1x256xf32> to vector<1x256xf32>
    %81 = vector.broadcast %80 : vector<1x256xf32> to vector<8x256xf32>
    %82 = arith.mulf %78, %81 : vector<8x256xf32>
    %c15_i32_17 = arith.constant 15 : i32
    %83 = tpu.dynamic_rotate %72 by %c15_i32_17 dim 1 : vector<8x256xf32>, i32 -> vector<8x256xf32>
    %84 = vector.extract_strided_slice %10 {offsets = [2, 0, 0], sizes = [1, 1, 256], strides = [1, 1, 1]} : vector<9x1x256xf32> to vector<1x1x256xf32>
    %85 = vector.shape_cast %84 : vector<1x1x256xf32> to vector<1x256xf32>
    %86 = vector.broadcast %85 : vector<1x256xf32> to vector<8x256xf32>
    %87 = arith.mulf %83, %86 : vector<8x256xf32>
    %c1_i32_18 = arith.constant 1 : i32
    %88 = tpu.dynamic_rotate %72 by %c1_i32_18 dim 1 : vector<8x256xf32>, i32 -> vector<8x256xf32>
    %89 = vector.extract_strided_slice %10 {offsets = [3, 0, 0], sizes = [1, 1, 256], strides = [1, 1, 1]} : vector<9x1x256xf32> to vector<1x1x256xf32>
    %90 = vector.shape_cast %89 : vector<1x1x256xf32> to vector<1x256xf32>
    %91 = vector.broadcast %90 : vector<1x256xf32> to vector<8x256xf32>
    %92 = arith.mulf %88, %91 : vector<8x256xf32>
    %93 = vector.extract_strided_slice %10 {offsets = [4, 0, 0], sizes = [1, 1, 256], strides = [1, 1, 1]} : vector<9x1x256xf32> to vector<1x1x256xf32>
    %94 = vector.shape_cast %93 : vector<1x1x256xf32> to vector<1x256xf32>
    %95 = vector.broadcast %94 : vector<1x256xf32> to vector<8x256xf32>
    %96 = arith.mulf %72, %95 : vector<8x256xf32>
    %c255_i32_19 = arith.constant 255 : i32
    %97 = tpu.dynamic_rotate %72 by %c255_i32_19 dim 1 : vector<8x256xf32>, i32 -> vector<8x256xf32>
    %98 = vector.extract_strided_slice %10 {offsets = [5, 0, 0], sizes = [1, 1, 256], strides = [1, 1, 1]} : vector<9x1x256xf32> to vector<1x1x256xf32>
    %99 = vector.shape_cast %98 : vector<1x1x256xf32> to vector<1x256xf32>
    %100 = vector.broadcast %99 : vector<1x256xf32> to vector<8x256xf32>
    %101 = arith.mulf %97, %100 : vector<8x256xf32>
    %c241_i32_20 = arith.constant 241 : i32
    %102 = tpu.dynamic_rotate %72 by %c241_i32_20 dim 1 : vector<8x256xf32>, i32 -> vector<8x256xf32>
    %103 = vector.extract_strided_slice %10 {offsets = [6, 0, 0], sizes = [1, 1, 256], strides = [1, 1, 1]} : vector<9x1x256xf32> to vector<1x1x256xf32>
    %104 = vector.shape_cast %103 : vector<1x1x256xf32> to vector<1x256xf32>
    %105 = vector.broadcast %104 : vector<1x256xf32> to vector<8x256xf32>
    %106 = arith.mulf %102, %105 : vector<8x256xf32>
    %c240_i32_21 = arith.constant 240 : i32
    %107 = tpu.dynamic_rotate %72 by %c240_i32_21 dim 1 : vector<8x256xf32>, i32 -> vector<8x256xf32>
    %108 = vector.extract_strided_slice %10 {offsets = [7, 0, 0], sizes = [1, 1, 256], strides = [1, 1, 1]} : vector<9x1x256xf32> to vector<1x1x256xf32>
    %109 = vector.shape_cast %108 : vector<1x1x256xf32> to vector<1x256xf32>
    %110 = vector.broadcast %109 : vector<1x256xf32> to vector<8x256xf32>
    %111 = arith.mulf %107, %110 : vector<8x256xf32>
    %c239_i32_22 = arith.constant 239 : i32
    %112 = tpu.dynamic_rotate %72 by %c239_i32_22 dim 1 : vector<8x256xf32>, i32 -> vector<8x256xf32>
    %113 = vector.extract_strided_slice %10 {offsets = [8, 0, 0], sizes = [1, 1, 256], strides = [1, 1, 1]} : vector<9x1x256xf32> to vector<1x1x256xf32>
    %114 = vector.shape_cast %113 : vector<1x1x256xf32> to vector<1x256xf32>
    %115 = vector.broadcast %114 : vector<1x256xf32> to vector<8x256xf32>
    %116 = arith.mulf %112, %115 : vector<8x256xf32>
    %117 = tpu.concatenate %77, %82, %87, %92, %96, %101, %106, %111, %116 in 0 : vector<8x256xf32>, vector<8x256xf32>, vector<8x256xf32>, vector<8x256xf32>, vector<8x256xf32>, vector<8x256xf32>, vector<8x256xf32>, vector<8x256xf32>, vector<8x256xf32> -> vector<72x256xf32>
    %cst_23 = arith.constant dense<0.000000e+00> : vector<8x256xf32>
    %118 = tpu.matmul %6, %117, %cst_23 {dimension_numbers = #tpu.dot_dimension_numbers<[1], [0], [0], [1], [0, 0, 1, 1], [], []>} : vector<8x72xf32>, vector<72x256xf32>, vector<8x256xf32> -> vector<8x256xf32>
    %119 = vector.broadcast %16 : vector<8x1xf32> to vector<8x256xf32>
    %120 = arith.mulf %118, %119 : vector<8x256xf32>
    %121 = vector.broadcast %18 : vector<8x1xf32> to vector<8x256xf32>
    %122 = arith.addf %120, %121 : vector<8x256xf32>
    %cst_24 = arith.constant dense<0.000000e+00> : vector<8x256xf32>
    %123 = tpu.matmul %8, %2, %cst_24 {dimension_numbers = #tpu.dot_dimension_numbers<[1], [0], [0], [1], [0, 0, 1, 1], [], []>} : vector<8x8xf32>, vector<8x256xf32>, vector<8x256xf32> -> vector<8x256xf32>
    %124 = vector.broadcast %20 : vector<8x1xf32> to vector<8x256xf32>
    %125 = arith.addf %123, %124 : vector<8x256xf32>
    %126 = arith.addf %122, %125 : vector<8x256xf32>
    %cst_25 = arith.constant 0.000000e+00 : f32
    %127 = vector.broadcast %cst_25 : f32 to vector<8x256xf32>
    %128 = arith.maximumf %126, %127 : vector<8x256xf32>
    %c0_26 = arith.constant 0 : index
    %c0_27 = arith.constant 0 : index
    %c0_28 = arith.constant 0 : index
    %129 = vector.load %arg7[%c0_26, %c0_27, %c0_28] : memref<1x8x256xf32, #tpu.memory_space<vmem>>, vector<1x8x256xf32>
    %130 = vector.shape_cast %129 : vector<1x8x256xf32> to vector<8x256xf32>
    %131 = vector.shape_cast %128 : vector<8x256xf32> to vector<1x8x256xf32>
    tpu.vector_store %arg7[%c0_26, %c0_27, %c0_28], %131 {strides = array<i32>} : memref<1x8x256xf32, #tpu.memory_space<vmem>>, vector<1x8x256xf32>,
    return
  }
  func.func @transform_0(%arg0: i32) -> (i32, i32, i32) {
    %c0_i32 = arith.constant 0 : i32
    %c0_i32_0 = arith.constant 0 : i32
    %c0_i32_1 = arith.constant 0 : i32
    return %arg0, %c0_i32, %c0_i32_0 : i32, i32, i32
  }
  func.func @transform_1(%arg0: i32) -> (i32, i32) {
    %c0_i32 = arith.constant 0 : i32
    %c0_i32_0 = arith.constant 0 : i32
    %c0_i32_1 = arith.constant 0 : i32
    return %c0_i32, %c0_i32_0 : i32, i32
  }
  func.func @transform_2(%arg0: i32) -> (i32, i32) {
    %c0_i32 = arith.constant 0 : i32
    %c0_i32_0 = arith.constant 0 : i32
    %c0_i32_1 = arith.constant 0 : i32
    return %c0_i32, %c0_i32_0 : i32, i32
  }
  func.func @transform_3(%arg0: i32) -> (i32, i32) {
    %c0_i32 = arith.constant 0 : i32
    %c0_i32_0 = arith.constant 0 : i32
    %c0_i32_1 = arith.constant 0 : i32
    return %c0_i32, %c0_i32_0 : i32, i32
  }
  func.func @transform_4(%arg0: i32) -> (i32, i32, i32) {
    %c0_i32 = arith.constant 0 : i32
    %c0_i32_0 = arith.constant 0 : i32
    %c0_i32_1 = arith.constant 0 : i32
    %c0_i32_2 = arith.constant 0 : i32
    return %c0_i32, %c0_i32_0, %c0_i32_1 : i32, i32, i32
  }
  func.func @transform_5(%arg0: i32) -> (i32, i32, i32) {
    %c0_i32 = arith.constant 0 : i32
    %c0_i32_0 = arith.constant 0 : i32
    %c0_i32_1 = arith.constant 0 : i32
    %c0_i32_2 = arith.constant 0 : i32
    return %c0_i32, %c0_i32_0, %c0_i32_1 : i32, i32, i32
  }
  func.func @transform_6(%arg0: i32) -> (i32, i32, i32) {
    %c0_i32 = arith.constant 0 : i32
    %c0_i32_0 = arith.constant 0 : i32
    %c0_i32_1 = arith.constant 0 : i32
    return %arg0, %c0_i32, %c0_i32_0 : i32, i32, i32
  }
}

</mosaic_0001>

<bundles_post_ra>
// kernel: tpu_custom_call.1
= control target key start
LH: loop header
LB: loop body
LE: loop exit
PB: predicated region body
PF: predicated region fallthrough
CT: control target
= control target key end

     0   :  { %11 = vsyncpa [#allocation3], 0  ;;  %s1478_s0 = inlined_call_operand.vmem [shape: bf16[2,8,256], index: 0, kind: input, shape index: {}]   ;;  %s1479_s1 = inlined_call_operand.vmem [shape: bf16[8,72], index: 1, kind: input, shape index: {}]   ;;  %s1480_s2 = inlined_call_operand.vmem [shape: bf16[8,72], index: 2, kind: input, shape index: {}]   ;;  %s1481_s3 = inlined_call_operand.vmem [shape: bf16[8,8], index: 3, kind: input, shape index: {}]   ;;  %s1482_s4 = inlined_call_operand.vmem [shape: f32[5,8,1], index: 4, kind: input, shape index: {}]   ;;  %s1483_s5 = inlined_call_operand.vmem [shape: f32[9,1,256], index: 5, kind: input, shape index: {}]   ;;  %s1484_s6 = inlined_call_operand.hbm [shape: f32[2,8,256], index: 6, kind: output, shape index: {}]  }
   0x1   :  { %13 = vsyncpa [#allocation3 + $0x1], 0  ;;  %s1103_s21 = smov 0   ;;  %s1105_s22 = smov 0  }
   0x2   :  { %s1107_s23 = smov 0   ;;  %s1109_s24 = smov 0  }
   0x3 LB: > { %s1124_s25 = sadd.s32 4294967295, %s1055_s24   ;;  %s853_s26 = sadd.s32 4294967294, %s1055_s24   ;;  %s1055_s24 = sphi %s1109_s24, %s1493_s24   ;;  %s1051_s23 = sphi %s1107_s23, %s1492_s23   ;;  %s1047_s22 = sphi %s1105_s22, %s1491_s22   ;;  %s1043_s21 = sphi %s1103_s21, %s1490_s21  }
   0x4   : > { %s1128_s27 = sadd.s32 1, %s1055_s24   ;;  %s157_s28 = sadd.s32 1, %s1051_s23 }
   0x5   : > { %s154_s29 = ssub.s32 %s1055_s24, %s1128_s27  ;;  %p167_p0 = scmp.ne.s32.totalorder %s1051_s23, %s1047_s22 }
   0x6   : > { %p155_p1 = scmp.eq.s32.totalorder %s154_s29, 0  ;;  %p168_p2 = scmp.eq.s32.totalorder %s1124_s25, 1 }
   0x7   : > { %p173_p3 = scmp.ne.s32.totalorder %s1047_s22, %s1043_s21  ;;  %p174_p4 = scmp.eq.s32.totalorder %s853_s26, 1 }
   0x8   : > { %s1139_s30 = scalar_select %p155_p1, %s1051_s23, %s157_s28  }
   0x9   : > { %p1141_p5 = por %p168_p2, %p167_p0  ;;  %p1145_p6 = por %p174_p4, %p173_p3 }
   0xa   : > { %p856_p7 = scmp.ge.s32.totalorder %s1055_s24, 1  ;;  %p215_p8 = scmp.lt.s32.totalorder %s1055_s24, 3 }
   0xc   : > { %p216_p9 = pnand %p856_p7, %p215_p8 }
   0xd   : > { %p245_p10 = scmp.lt.s32.totalorder (!%p216_p9), %s1124_s25, 1  ;;  %s1057_s14 = smov (!%p216_p9), 15   ;;  %v1065_v4 = vmov (!%p216_p9), 0.0   ;;  %v259_v5 = vld [vmem:[%s1482_s4] sm:$0xff] (!%p216_p9)  ;;  %v260_v6 = vld [vmem:[%s1482_s4 + $0x8] sm:$0xff] (!%p216_p9)  ;;  %v1066_v7 = vmov (!%p216_p9), 0   ;;  %v277_v8 = vlaneseq (!%p216_p9) }
   0xe   : > { %219 = sbr.rel (%p216_p9) target bundleno = 778 (0x30a), region = 44  ;;  %s1058_s15 = smov (!%p216_p9), 17   ;;  %516 = vmatprep.mubr.f32.mxu0 (!%p216_p9), %v1065_v4  ;;  %672 = vmatprep.mubr.f32.mxu1 (!%p216_p9), %v1065_v4  ;;  %v264_v12 = vld [vmem:[%s1483_s5] sm:$0x3] (!%p216_p9)  ;;  %v265_v14 = vld [vmem:[%s1483_s5 + $0x2] sm:$0x3] (!%p216_p9) }
   0xf   : > { %s1059_s16 = smov (!%p216_p9), 1   ;;  %s1060_s17 = smov (!%p216_p9), 16   ;;  %991 = vset.pattern.permute.xlu0 (!%p216_p9), %v1066_v7  ;;  %992 = vset.pattern.permute.xlu1 (!%p216_p9), %v1066_v7  ;;  %v284_v9 = vshrl.u32 (!%p216_p9), %v277_v8, 7  ;;  %v1178_v10 = vand.u32 (!%p216_p9), 127, %v277_v8  ;;  %v268_v15 = vld [vmem:[%s1483_s5 + $0x8] sm:$0x3] (!%p216_p9) }
  0x10   : > { %s1061_s18 = smov (!%p216_p9), 127   ;;  %s1062_s19 = smov (!%p216_p9), 113   ;;  %v266_v16 = vld [vmem:[%s1483_s5 + $0x4] sm:$0x3] (!%p216_p9)  ;;  %v267_v18 = vld [vmem:[%s1483_s5 + $0x6] sm:$0x3] (!%p216_p9) }
  0x11   : > { %s1063_s20 = smov (!%p216_p9), 112   ;;  %s1485_s26 = smov (!%p216_p9), 111   ;;  %v1180_v11 = vsub.s32 (!%p216_p9), 1, %v284_v9  ;;  %v1185_v13 = vsub.s32 (!%p216_p9), 0, %v284_v9  ;;  %vm319_vm0 = vcmp.lt.s32.totalorder (!%p216_p9), %v1178_v10, 15  ;;  %vm339_vm1 = vcmp.lt.s32.totalorder (!%p216_p9), %v1178_v10, 1 }
  0x12   : > { %vm279_vm2 = vcmp.lt.s32.totalorder (!%p216_p9), %v1178_v10, 17  ;;  %vm299_vm3 = vcmp.lt.s32.totalorder (!%p216_p9), %v1178_v10, 16  ;;  %vm372_vm4 = vcmp.lt.s32.totalorder (!%p216_p9), %v1178_v10, 127  ;;  %v269_v24 = vld [vmem:[%s1483_s5 + $0xa] sm:$0x3] (!%p216_p9)  ;;  %vm392_vm5 = vcmp.lt.s32.totalorder (!%p216_p9), %v1178_v10, 113 }
  0x13   : > { %v1200_v17 = vrot.slane (!%p216_p9), %v264_v12, %v1180_v11  ;;  %v1208_v21 = vrot.slane (!%p216_p9), %v265_v14, %v1180_v11  ;;  %v1211_v22 = vrot.slane (!%p216_p9), %v264_v12, %v1185_v13  ;;  %v1214_v23 = vrot.slane (!%p216_p9), %v265_v14, %v1185_v13  ;;  %v270_v37 = vld [vmem:[%s1483_s5 + $0xc] sm:$0x3] (!%p216_p9)  ;;  %s242_s11 = sand.u32 (!%p216_p9), 1, %s1047_s22  }
  0x14   : > { %v1220_v25 = vrot.slane (!%p216_p9), %v268_v15, %v1180_v11  ;;  %v1223_v30 = vrot.slane (!%p216_p9), %v266_v16, %v1180_v11  ;;  %v1226_v31 = vrot.slane (!%p216_p9), %v267_v18, %v1180_v11  ;;  %v1230_v32 = vrot.slane (!%p216_p9), %v266_v16, %v1185_v13  ;;  %s857_s12 = sshll.u32 (!%p216_p9), %s242_s11, 4 }
  0x15   : > { %s246_s9 = scalar_select %p245_p10, %s1124_s25, 1  ;;  %v1237_v35 = vrot.slane %v267_v18, %v1185_v13  ;;  %v1240_v36 = vrot.slane %v269_v24, %v1180_v11  ;;  %vm412_vm6 = vcmp.lt.s32.totalorder %v1178_v10, 112  ;;  %v1251_v42 = vrot.slane %v268_v15, %v1185_v13 }
  0x16   : > { %v1254_v43 = vrot.slane %v269_v24, %v1185_v13  ;;  %v1261_v51 = vrot.slane %v270_v37, %v1180_v11  ;;  %vm432_vm7 = vcmp.lt.s32.totalorder %v1178_v10, 111  ;;  %vm448_vm8 = vcmask 588800  }
  0x17   : > { %s868_s10 = sshll.u32 %s246_s9, 3  ;;  %vm698_vm9 = vcmask 64512  }
  0x18   : > { %s249_s13 = scalar_lea.vmem %s1478_s0, %s868_s10 }
  0x19   : > { %v250_v0 = vld [vmem:[%s249_s13] sm:$0xff]  ;;  %s244_s13 = scalar_lea.vmem [#allocation2], %s857_s12 }
  0x1a   : > { %v1156_v1 = vunpack.c.l.bf16 %v250_v0  ;;  %v1158_v2 = vunpack.c.h.bf16 %v250_v0  ;;  %s794_s28 = sshll.u32 %s244_s13, 4  ;;  %s1438_s28 = int_to_ptr.vmem [resolvable:$true] %s794_s28 }
  0x1c   : > { %v961_v3 = vpack.i.bf16 %v1158_v2, %v1156_v1  ;;  %v367_v41 = vmul.f32 %v1220_v25, %v1158_v2  ;;  %v366_v16 = vmul.f32 %v1251_v42, %v1156_v1 }
  0x1e   : > { %962 = vrot.lane.b32.xlu1 %v961_v3, %s1057_s14  ;;  %952 = vrot.lane.b32.xlu0 %v961_v3, %s1058_s15 }
  0x22   : > { %967 = vrot.lane.b32.xlu1 %v961_v3, %s1059_s16  ;;  %957 = vrot.lane.b32.xlu0 %v961_v3, %s1060_s17 }
  0x26   : > { %972 = vrot.lane.b32.xlu0 %v961_v3, %s1061_s18  ;;  %977 = vrot.lane.b32.xlu1 %v961_v3, %s1062_s19 }
  0x2a   : > { %982 = vrot.lane.b32.xlu0 %v961_v3, %s1063_s20  ;;  %987 = vrot.lane.b32.xlu1 %v961_v3, %s1485_s26  ;;  %s869_s26 = sshll.u32 %s1124_s25, 8  ;;  %s1067_s25 = smov [#allocation2]  }
  0x2e   : > { %525 = vperm.xlu0 %991, %v259_v5   ;;  %532 = vperm.xlu1 %992, %v260_v6   ;;  %v271_v5 = vld [vmem:[%s1483_s5 + $0xe] sm:$0x3] }
  0x90   : > { %v963_v19 = vpop.permute.xlu1 %962  ;;  %v953_v20 = vpop.permute.xlu0 %952 }
  0x91   : > { %v965_v26 = vunpack.i.h.bf16 %v963_v19  ;;  %v964_v27 = vunpack.i.l.bf16 %v963_v19  ;;  %v955_v28 = vunpack.i.h.bf16 %v953_v20  ;;  %v954_v29 = vunpack.i.l.bf16 %v953_v20 }
  0x93   : > { %v280_v33 = vsel %vm279_vm2, %v954_v29, %v955_v28  ;;  %v281_v34 = vsel %vm279_vm2, %v955_v28, %v954_v29  ;;  %v320_v38 = vsel %vm319_vm0, %v964_v27, %v965_v26  ;;  %v321_v48 = vsel %vm319_vm0, %v965_v26, %v964_v27 }
  0x94   : > { %v968_v39 = vpop.permute.xlu1 %967  ;;  %v958_v40 = vpop.permute.xlu0 %957  ;;  %v294_v49 = vmul.f32 %v1200_v17, %v280_v33  ;;  %v293_v50 = vmul.f32 %v1211_v22, %v281_v34  ;;  %v334_v59 = vmul.f32 %v1223_v30, %v320_v38  ;;  %v333_v8 = vmul.f32 %v1230_v32, %v321_v48  ;;  %v272_v48 = vld [vmem:[%s1483_s5 + $0x10] sm:$0x3] }
  0x95   : > { %v970_v44 = vunpack.i.h.bf16 %v968_v39  ;;  %v969_v45 = vunpack.i.l.bf16 %v968_v39  ;;  %v960_v46 = vunpack.i.h.bf16 %v958_v40  ;;  %v959_v47 = vunpack.i.l.bf16 %v958_v40 }
  0x96   : > { %v1290_v26 = vrot.slane %v271_v5, %v1180_v11  ;;  %v1293_v27 = vrot.slane %v270_v37, %v1185_v13  ;;  %v1297_v34 = vrot.slane %v271_v5, %v1185_v13 }
  0x97   : > { %v340_v52 = vsel %vm339_vm1, %v969_v45, %v970_v44  ;;  %v341_v53 = vsel %vm339_vm1, %v970_v44, %v969_v45  ;;  %v300_v54 = vsel %vm299_vm3, %v959_v47, %v960_v46  ;;  %v301_v55 = vsel %vm299_vm3, %v960_v46, %v959_v47 }
  0x98   : > { %v973_v56 = vpop.permute.xlu0 %972  ;;  %v314_v57 = vmul.f32 %v1208_v21, %v300_v54  ;;  %v313_v58 = vmul.f32 %v1214_v23, %v301_v55  ;;  %v354_v60 = vmul.f32 %v1226_v31, %v340_v52  ;;  %v978_v61 = vpop.permute.xlu1 %977  ;;  %v353_v9 = vmul.f32 %v1237_v35, %v341_v53 }
  0x99   : > { %v975_v62 = vunpack.i.h.bf16 %v973_v56  ;;  %v974_v63 = vunpack.i.l.bf16 %v973_v56  ;;  %v980_v0 = vunpack.i.h.bf16 %v978_v61  ;;  %v979_v3 = vunpack.i.l.bf16 %v978_v61 }
  0x9a   : > { %v870_v6 = vpack.c.bf16 %v314_v57, %v294_v49  ;;  %v872_v7 = vpack.c.bf16 %v313_v58, %v293_v50  ;;  %v874_v18 = vpack.c.bf16 %v354_v60, %v334_v59  ;;  %v876_v39 = vpack.c.bf16 %v353_v9, %v333_v8  ;;  %v253_v60 = vld [vmem:[%s1479_s1] sm:$0xf] }
  0x9b   : > { %v373_v12 = vsel %vm372_vm4, %v974_v63, %v975_v62  ;;  %v374_v14 = vsel %vm372_vm4, %v975_v62, %v974_v63  ;;  %v394_v15 = vsel %vm392_vm5, %v980_v0, %v979_v3  ;;  %v393_v38 = vsel %vm392_vm5, %v979_v3, %v980_v0 }
  0x9c   : > { %871 = vmatprep.subr.bf16.mxu0 %v870_v6  ;;  %v983_v19 = vpop.permute.xlu0 %982  ;;  %v387_v20 = vmul.f32 %v1240_v36, %v374_v14  ;;  %v988_v24 = vpop.permute.xlu1 %987  ;;  %v386_v33 = vmul.f32 %v1254_v43, %v373_v12  ;;  %v407_v44 = vmul.f32 %v1261_v51, %v394_v15  ;;  %v406_v50 = vmul.f32 %v1293_v27, %v393_v38  ;;  %v263_v15 = vld [vmem:[%s1482_s4 + $0x20] sm:$0xff] }
  0x9d   : > { %873 = vmatpush1.bf16.msra.mxu0 %v872_v7  ;;  %v985_v28 = vunpack.i.h.bf16 %v983_v19  ;;  %v984_v29 = vunpack.i.l.bf16 %v983_v19  ;;  %v990_v46 = vunpack.i.h.bf16 %v988_v24  ;;  %v989_v47 = vunpack.i.l.bf16 %v988_v24 }
  0x9e   : > { %875 = vmatprep.subr.bf16.mxu0 %v874_v18  ;;  %v878_v40 = vpack.c.bf16 %v387_v20, %v367_v41  ;;  %v880_v41 = vpack.c.bf16 %v386_v33, %v366_v16  ;;  %v1314_v54 = vrot.slane %v272_v48, %v1180_v11  ;;  %v1319_v57 = vrot.slane %v272_v48, %v1185_v13  ;;  %v257_v13 = vld [vmem:[%s1481_s3] sm:$0xf] }
  0x9f   : > { %v413_v37 = vsel %vm412_vm6, %v984_v29, %v985_v28  ;;  %v414_v45 = vsel %vm412_vm6, %v985_v28, %v984_v29  ;;  %v434_v55 = vsel %vm432_vm7, %v990_v46, %v989_v47  ;;  %v433_v59 = vsel %vm432_vm7, %v989_v47, %v990_v46 }
  0xa0   : > { %v427_v49 = vmul.f32 %v1290_v26, %v414_v45  ;;  %v426_v52 = vmul.f32 %v1297_v34, %v413_v37  ;;  %v447_v58 = vmul.f32 %v1314_v54, %v434_v55  ;;  %v446_v11 = vmul.f32 %v1319_v57, %v433_v59 }
  0xa1   : > { %877 = vmatpush1.bf16.msra.mxu0 %v876_v39  ;;  %v254_v61 = vunpack.c.l.bf16 %v253_v60  ;;  %v258_v62 = vunpack.c.l.bf16 %v257_v13 }
  0xa2   : > { %879 = vmatprep.subr.bf16.mxu0 %v878_v40  ;;  %v882_v53 = vpack.c.bf16 %v427_v49, %v407_v44  ;;  %v884_v56 = vpack.c.bf16 %v426_v52, %v406_v50 }
  0xa5   : > { %881 = vmatpush1.bf16.msra.mxu0 %v880_v41 }
  0xa6   : > { %883 = vmatprep.subr.bf16.mxu0 %v882_v53 }
  0xa9   : > { %885 = vmatpush1.bf16.msra.mxu0 %v884_v56 }
  0xaa   : > { %468 = vmatprep.subr.mxu0 %v447_v58 }
  0xad   : > { %469 = vmatpush1.msra.mxu0 %v446_v11  ;;  %v526_v63 = vpop.permute.xlu0 %525  ;;  %v533_v3 = vpop.permute.xlu1 %532 }
  0xae   : > { %860 = vmatmul.mubr.msk.f32.vlgmr.msra.gmra.mrb[0].mxu0 %vm448_vm8, %v254_v61  ;;  %702 = vmatprep.subr.mxu0 %v1158_v2  ;;  %v262_v2 = vld [vmem:[%s1482_s4 + $0x18] sm:$0xff] }
  0xaf   : > { %703 = vmatpush1.msra.mxu0 %v1156_v1  ;;  %766 = vmatprep.mubr.f32.mxu0 %v1065_v4  ;;  %v261_v1 = vld [vmem:[%s1482_s4 + $0x10] sm:$0xff] }
  0xb2   : > { %862 = vmatmul.mubr.msk.f32.vlgmr.msra.gmra.mrb[2].mxu0 %vm698_vm9, %v258_v62 }
 0x181   : > { %v518_v0 = vpop.f32.mrb[0].mxu0 }
 0x182   : > { %v528_v5 = vmul.f32 %v526_v63, %v518_v0  ;;  %v520_v6 = vpop.f32.mrb[1].mxu0 }
 0x183   : > { %v529_v7 = vmul.f32 %v526_v63, %v520_v6 }
 0x184   : > { %v535_v8 = vadd.f32 %v533_v3, %v528_v5 }
 0x185   : > { %v536_v9 = vadd.f32 %v533_v3, %v529_v7  ;;  %v1367_v4 = vpop.f32.mrb[2].mxu0 }
 0x186   : > { %v1335_v12 = vmax.f32 %v535_v8, 0.0  ;;  %v1372_v16 = vpop.f32.mrb[3].mxu0 }
 0x187   : > { %v538_v14 = vmax.f32 %v536_v9, 0.0 }
 0x188   : > { %539 = vrot.lane.b32.xlu1 %v1335_v12, %s1058_s15 }
 0x189   : > { %541 = vrot.lane.b32.xlu0 %v538_v14, %s1058_s15  ;;  %s1436_s15 = scalar_lea.hbm %s1484_s6, %s869_s26 }
 0x18c   : > { %547 = vrot.lane.b32.xlu1 %v1335_v12, %s1060_s17 }
 0x18d   : > { %549 = vrot.lane.b32.xlu0 %v538_v14, %s1060_s17  ;;  %s993_s17 = scalar_lea.vmem %s1438_s28, 256 }
 0x18e   : > { %p994_p11 = scmp.ne.s32.totalorder %s1438_s28, %s993_s17 }
 0x190   : > { %555 = vrot.lane.b32.xlu1 %v1335_v12, %s1057_s14  ;;  %p995_p12 = pnand %p994_p11, %p1141_p5 }
 0x191   : > { %557 = vrot.lane.b32.xlu0 %v538_v14, %s1057_s14  ;;  %s1489_s14 = smov 111  }
 0x192   : > { %p996_p13 = pneg %p995_p12 }
 0x194   : > { %563 = vrot.lane.b32.xlu1 %v1335_v12, %s1059_s16 }
 0x195   : > { %565 = vrot.lane.b32.xlu0 %v538_v14, %s1059_s16  ;;  %s780_s16 = scalar_lea.sflag [#allocation3], %s242_s11 }
 0x198   : > { %573 = vrot.lane.b32.xlu1 %v1335_v12, %s1061_s18 }
 0x199   : > { %575 = vrot.lane.b32.xlu0 %v538_v14, %s1061_s18  ;;  %s997_s18 = sshll.u32 %s1067_s25, 4  ;;  %s998_s18 = int_to_ptr.vmem [resolvable:$false] %s997_s18 }
 0x19a   : > { %p1000_p0 = scmp.lt.s32.totalorder %s1438_s28, %s998_s18 }
 0x19c   : > { %581 = vrot.lane.b32.xlu1 %v1335_v12, %s1062_s19 }
 0x19d   : > { %583 = vrot.lane.b32.xlu0 %v538_v14, %s1062_s19  ;;  %s999_s19 = scalar_lea.vmem %s998_s18, 512 }
 0x19e   : > { %p1001_p1 = scmp.lt.s32.totalorder %s999_s19, %s993_s17 }
 0x1a0   : > { %589 = vrot.lane.b32.xlu1 %v1335_v12, %s1063_s20  ;;  %p1002_p2 = por %p1001_p1, %p1000_p0 }
 0x1a1   : > { %591 = vrot.lane.b32.xlu0 %v538_v14, %s1063_s20 }
 0x1a2   : > { %p1003_p3 = pnand %p1002_p2, %p996_p13 }
 0x1a4   : > { %597 = vrot.lane.b32.xlu1 %v1335_v12, %s1489_s14 }
 0x1a5   : > { %599 = vrot.lane.b32.xlu0 %v538_v14, %s1489_s14 }
 0x1a8   : > { %681 = vperm.xlu1 %992, %v261_v1  }
 0x1a9   : > { %688 = vperm.xlu0 %991, %v262_v2  }
 0x1ac   : > { %695 = vperm.xlu1 %992, %v263_v15  }
 0x1fa   : > { %v540_v18 = vpop.permute.xlu1 %539 }
 0x1fb   : > { %v542_v19 = vpop.permute.xlu0 %541 }
 0x1fc   : > { %v543_v20 = vsel %vm279_vm2, %v540_v18, %v542_v19  ;;  %v544_v24 = vsel %vm279_vm2, %v542_v19, %v540_v18  ;;  %v255_v18 = vld [vmem:[%s1480_s2] sm:$0xf] }
 0x1fd   : > { %v545_v39 = vmul.f32 %v544_v24, %v1211_v22  ;;  %v546_v44 = vmul.f32 %v543_v20, %v1200_v17 }
 0x1fe   : > { %v548_v28 = vpop.permute.xlu1 %547 }
 0x1ff   : > { %v550_v29 = vpop.permute.xlu0 %549 }
 0x200   : > { %v551_v33 = vsel %vm299_vm3, %v548_v28, %v550_v29  ;;  %v552_v38 = vsel %vm299_vm3, %v550_v29, %v548_v28 }
 0x201   : > { %v553_v40 = vmul.f32 %v552_v38, %v1214_v23  ;;  %v554_v37 = vmul.f32 %v551_v33, %v1208_v21 }
 0x202   : > { %v556_v45 = vpop.permute.xlu1 %555 }
 0x203   : > { %v558_v46 = vpop.permute.xlu0 %557  ;;  %v886_v47 = vpack.c.bf16 %v554_v37, %v546_v44  ;;  %v888_v48 = vpack.c.bf16 %v553_v40, %v545_v39 }
 0x204   : > { %v559_v49 = vsel %vm319_vm0, %v556_v45, %v558_v46  ;;  %v560_v41 = vsel %vm319_vm0, %v558_v46, %v556_v45 }
 0x205   : > { %887 = vmatprep.subr.bf16.mxu1 %v886_v47  ;;  %v561_v21 = vmul.f32 %v560_v41, %v1230_v32  ;;  %v562_v52 = vmul.f32 %v559_v49, %v1223_v30  ;;  %v572_v30 = vmul.f32 %v538_v14, %v1220_v25 }
 0x206   : > { %v564_v50 = vpop.permute.xlu1 %563  ;;  %889 = vmatpush1.bf16.msra.mxu1 %v888_v48 }
 0x207   : > { %v566_v22 = vpop.permute.xlu0 %565 }
 0x208   : > { %v567_v23 = vsel %vm339_vm1, %v564_v50, %v566_v22  ;;  %v568_v17 = vsel %vm339_vm1, %v566_v22, %v564_v50 }
 0x209   : > { %v569_v53 = vmul.f32 %v568_v17, %v1237_v35  ;;  %v570_v55 = vmul.f32 %v567_v23, %v1226_v31  ;;  %v571_v31 = vmul.f32 %v1335_v12, %v1251_v42 }
 0x20a   : > { %v574_v56 = vpop.permute.xlu1 %573 }
 0x20b   : > { %v576_v58 = vpop.permute.xlu0 %575  ;;  %v890_v59 = vpack.c.bf16 %v570_v55, %v562_v52  ;;  %v892_v60 = vpack.c.bf16 %v569_v53, %v561_v21 }
 0x20c   : > { %v577_v11 = vsel %vm372_vm4, %v574_v56, %v576_v58  ;;  %v578_v61 = vsel %vm372_vm4, %v576_v58, %v574_v56 }
 0x20d   : > { %v579_v13 = vmul.f32 %v577_v11, %v1254_v43  ;;  %v580_v32 = vmul.f32 %v578_v61, %v1240_v36  ;;  %891 = vmatprep.subr.bf16.mxu1 %v890_v59 }
 0x20e   : > { %v582_v35 = vpop.permute.xlu1 %581  ;;  %893 = vmatpush1.bf16.msra.mxu1 %v892_v60 }
 0x20f   : > { %v584_v62 = vpop.permute.xlu0 %583  ;;  %v894_v63 = vpack.c.bf16 %v580_v32, %v572_v30  ;;  %v896_v0 = vpack.c.bf16 %v579_v13, %v571_v31 }
 0x210   : > { %v585_v3 = vsel %vm392_vm5, %v582_v35, %v584_v62  ;;  %v586_v43 = vsel %vm392_vm5, %v584_v62, %v582_v35 }
 0x211   : > { %895 = vmatprep.subr.bf16.mxu1 %v894_v63  ;;  %v587_v6 = vmul.f32 %v585_v3, %v1293_v27  ;;  %v588_v7 = vmul.f32 %v586_v43, %v1261_v51 }
 0x212   : > { %v590_v5 = vpop.permute.xlu1 %589  ;;  %897 = vmatpush1.bf16.msra.mxu1 %v896_v0 }
 0x213   : > { %v592_v36 = vpop.permute.xlu0 %591 }
 0x214   : > { %v593_v25 = vsel %vm412_vm6, %v590_v5, %v592_v36  ;;  %v594_v42 = vsel %vm412_vm6, %v592_v36, %v590_v5 }
 0x215   : > { %v595_v8 = vmul.f32 %v593_v25, %v1297_v34  ;;  %v596_v9 = vmul.f32 %v594_v42, %v1290_v26  ;;  %v256_v26 = vunpack.c.l.bf16 %v255_v18 }
 0x216   : > { %v598_v12 = vpop.permute.xlu1 %597 }
 0x217   : > { %v600_v14 = vpop.permute.xlu0 %599  ;;  %v898_v1 = vpack.c.bf16 %v596_v9, %v588_v7  ;;  %v900_v2 = vpack.c.bf16 %v595_v8, %v587_v6 }
 0x218   : > { %v602_v15 = vsel %vm432_vm7, %v600_v14, %v598_v12  ;;  %v601_v27 = vsel %vm432_vm7, %v598_v12, %v600_v14 }
 0x219   : > { %v604_v51 = vmul.f32 %v602_v15, %v1314_v54  ;;  %899 = vmatprep.subr.bf16.mxu1 %v898_v1  ;;  %v603_v34 = vmul.f32 %v601_v27, %v1319_v57 }
 0x21a   : > { %901 = vmatpush1.bf16.msra.mxu1 %v900_v2 }
 0x21b   : > { %624 = vmatprep.subr.mxu1 %v604_v51 }
 0x21e   : > { %625 = vmatpush1.msra.mxu1 %v603_v34 }
 0x21f   : > { %861 = vmatmul.mubr.msk.f32.vlgmr.msra.gmra.mrb[0].mxu1 %vm448_vm8, %v256_v26 }
 0x227   : > { %v682_v19 = vpop.permute.xlu1 %681 }
 0x228   : > { %v689_v29 = vpop.permute.xlu0 %688 }
 0x22b   : > { %v696_v20 = vpop.permute.xlu1 %695 }
 0x22c   : > { %v769_v54 = vadd.f32 %v1367_v4, %v696_v20  ;;  %v771_v39 = vadd.f32 %v1372_v16, %v696_v20 }
 0x2f2   : > { %v674_v24 = vpop.f32.mrb[0].mxu1 }
 0x2f3   : > { %v684_v28 = vmul.f32 %v682_v19, %v674_v24  ;;  %v676_v10 = vpop.f32.mrb[1].mxu1 }
 0x2f4   : > { %v685_v33 = vmul.f32 %v682_v19, %v676_v10 }
 0x2f5   : > { %v691_v38 = vadd.f32 %v689_v29, %v684_v28 }
 0x2f6   : > { %v692_v57 = vadd.f32 %v689_v29, %v685_v33 }
 0x2f7   : > { %v773_v40 = vadd.f32 %v769_v54, %v691_v38 }
 0x2f8   : > { %v774_v44 = vadd.f32 %v771_v39, %v692_v57 }
 0x2f9   : > { %v775_v37 = vmax.f32 %v773_v40, 0.0 }
 0x2fa   : > { %v776_v45 = vmax.f32 %v774_v44, 0.0 }
 0x2fb   : > { %777 = vst [vmem:[%s244_s13] sm:$0xff] %v775_v37 }
 0x2fc   : > { %778 = vst [vmem:[%s244_s13 + $0x8] sm:$0xff] %v776_v45 }
 0x2fd   : > { %1006 = shalt.err (!%p1003_p3)
}
 0x2fe   : > { %s1007_s9 = scalar_lea.hbm %s1436_s15, 256  ;;  %s1011_s11 = scalar_lea.hbm %s1484_s6, 512 }
 0x2ff   : > { %p1008_p4 = scmp.ne.s32.totalorder %s1436_s15, %s1007_s9  ;;  %p1012_p9 = scmp.lt.u32.totalorder %s1436_s15, %s1484_s6 }
 0x300   : > { %p1013_p10 = scmp.lt.u32.totalorder %s1011_s11, %s1007_s9  ;;  %p1015_p12 = scmp.lt.u32.totalorder %s1007_s9, %s1436_s15 }
 0x301   : > { %p1009_p7 = pnand %p1008_p4, %p1141_p5 }
 0x302   : > { %p1014_p11 = por %p1013_p10, %p1012_p9 }
 0x303   : > { %p1010_p8 = pneg %p1009_p7 }
 0x304   : > { %p1016_p13 = por %p1015_p12, %p1014_p11 }
 0x306   : > { %p1017_p0 = pnand %p1016_p13, %p1010_p8 }
 0x308   : > { %1020 = shalt.err (!%p1017_p0)
}
 0x309   : > { %902 = dma.vmem_to_hbm [thread:$0]  (%p1141_p5), %s1438_s28, 256, %s1436_s15, %s780_s16  }
 0x30a PF: > { %p908_p1 = scmp.ge.s32.totalorder %s1055_s24, 2  ;;  %s806_s13 = sand.u32 1, %s1043_s21  }
 0x30b   : > { %s807_s29 = scalar_lea.sflag [#allocation3], %s806_s13 }
 0x30c   : > { %p905_p2 = pnand %p908_p1, %p1145_p6 }
 0x30e   : > { %1038 = dma.done.wait (!%p905_p2), %s807_s29, 256  }
 0x30f   : > { %1040 = vsyncadd (!%p905_p2), %s807_s29, 4294967040  ;;  %p16_p3 = scmp.ge.s32.totalorder %s1128_s27, 4   ;;  %s1490_s21 = smov %s1047_s22 }
 0x310   : > { %s1491_s22 = smov %s1051_s23  ;;  %s1492_s23 = smov %s1139_s30 }
 0x311   : > { %s1493_s24 = smov %s1128_s27  ;;  %18 = sbr.rel (!%p16_p3) target bundleno = 3 (0x3), region = 79 }
 0x318   :  { %812 = vsyncpa [#allocation3], 1 }
 0x319   :  { %814 = vsyncpa [#allocation3 + $0x1], 1 }

</bundles_post_ra>
